<compile_context>
chip_gen: v7x
topology: tpu7x:2x2x1
jax: 0.10.0
libtpu: 0.0.40
codegen_flags: <defaults>
</compile_context>

<pallas_src>
import functools
import math

import jax
import jax.numpy as jnp
from jax.experimental import pallas as pl
from jax.experimental.pallas import tpu as pltpu


# ----------------------------- kernels ------------------------------------- #

def _pe_add_kernel(x_ref, pe_ref, o_ref):
    # x_ref / pe_ref / o_ref: (TS, B*D) lane/sublane-dense tiles.
    o_ref[...] = x_ref[...] + pe_ref[...]


def _pe_add_dropout_kernel(x_ref, pe_ref, bits_ref, o_ref, *, threshold, scale):
    # Inverted-scale dropout: zero w.p. p, keep * 1/(1-p).
    # keep <=> uniform u32 >= round(p * 2^32)  (P(keep) = 1 - p).
    y = x_ref[...] + pe_ref[...]
    keep = bits_ref[...] >= jnp.uint32(threshold)
    o_ref[...] = jnp.where(keep, y * jnp.asarray(scale, dtype=y.dtype),
                           jnp.zeros_like(y))


# ----------------------------- glue ---------------------------------------- #

def make_pos_encoding(max_len: int, dim_model: int) -> jnp.ndarray:
    """Deterministic sin/cos table, identical math to the PyTorch __init__."""
    positions = jnp.arange(max_len, dtype=jnp.float32)[:, None]                 # (L, 1)
    division_term = jnp.exp(
        jnp.arange(0, dim_model, 2, dtype=jnp.float32)
        * (-math.log(10000.0) / dim_model)
    )                                                                           # (D/2,)
    pe = jnp.zeros((max_len, dim_model), dtype=jnp.float32)
    pe = pe.at[:, 0::2].set(jnp.sin(positions * division_term))
    pe = pe.at[:, 1::2].set(jnp.cos(positions * division_term))
    return pe[:, None, :]                                                       # (L, 1, D)


def _pick_seq_tile(S: int, row_bytes: int, budget_bytes: int = 2 << 20) -> int:
    """Largest seq tile that is a multiple of 8, divides S, fits ~budget.

    ~2 MiB per x-block keeps (x + pe + bits + out, double-buffered) well under
    the scoped VMEM limit on every generation (incl. v7x's 64 MiB VMEM) while
    giving >= ~8 grid steps for realistic S so DMA overlaps compute.
    """
    if S % 8 != 0:
        return S  # must use the full dim to satisfy the (8,128) block rule
    ts = min(S, max(8, (budget_bytes // max(row_bytes, 1)) // 8 * 8))
    while S % ts != 0:
        ts -= 8
    return max(ts, 8)


def positional_encoding_forward(token_embedding: jnp.ndarray,
                                pos_encoding: jnp.ndarray,
                                dropout_p: float = 0.0,
                                rng_key=None) -> jnp.ndarray:
    """forward(x) = dropout(x + pos_encoding[:S])  for x of shape (S, B, D)."""
    S, B, D = token_embedding.shape
    dtype = token_embedding.dtype
    W = B * D

    dropout_p = float(dropout_p)
    if dropout_p >= 1.0:
        return jnp.zeros_like(token_embedding)

    # Lane/sublane-dense layout: (S, B*D). The reshape is a contiguous view;
    # the PE table is pre-tiled across batch once (tiny) so the kernel does a
    # plain 2D add with full (8,128) tiles and no in-kernel broadcast.
    x2d = token_embedding.reshape(S, W)
    pe2d = jnp.tile(pos_encoding[:S, 0, :].astype(dtype), (1, B))               # (S, W)

    ts = _pick_seq_tile(S, W * jnp.dtype(dtype).itemsize)
    grid = (S // ts,)
    spec = pl.BlockSpec((ts, W), lambda i: (i, 0))

    cparams = pltpu.CompilerParams(dimension_semantics=("parallel",))

    if dropout_p > 0.0:
        if rng_key is None:
            rng_key = jax.random.PRNGKey(0)
        # Random bits from plain JAX (portable: TPU + interpret mode). The
        # dropout mask semantics match PyTorch (zero w.p. p, scale 1/(1-p));
        # the RNG stream itself is JAX's, not PyTorch's.
        bits = jax.random.bits(rng_key, (S, W), dtype=jnp.uint32)
        threshold = min(int(round(dropout_p * (2 ** 32))), 2 ** 32 - 1)
        kernel = functools.partial(_pe_add_dropout_kernel,
                                   threshold=threshold,
                                   scale=1.0 / (1.0 - dropout_p))
        out2d = pl.pallas_call(
            kernel,
            out_shape=jax.ShapeDtypeStruct((S, W), dtype),
            grid=grid,
            in_specs=[spec, spec, spec],
            out_specs=spec,
            compiler_params=cparams,
        )(x2d, pe2d, bits)
    else:
        out2d = pl.pallas_call(
            _pe_add_kernel,
            out_shape=jax.ShapeDtypeStruct((S, W), dtype),
            grid=grid,
            in_specs=[spec, spec],
            out_specs=spec,
            compiler_params=cparams,
        )(x2d, pe2d)

    return out2d.reshape(S, B, D)


# ----------------------------- demo / check --------------------------------- #

if __name__ == "__main__":
    # Module hyper-params (deterministic, in-script).
    dim_model = 128
    max_len = 16
    dropout_p = 0.1

    # Input: (seq_len, batch, dim_model) — PyTorch nn.Transformer seq-first.
    S, B = 8, 4
    key = jax.random.PRNGKey(0)
    kx, kdrop = jax.random.split(key)
    x = jax.random.normal(kx, (S, B, dim_model), dtype=jnp.float32)

    pos_encoding = make_pos_encoding(max_len, dim_model)        # (max_len, 1, D)

    # 1) Eval-mode check (dropout off): must match x + pe[:S] (batch-broadcast).
    out_eval = jax.block_until_ready(
        positional_encoding_forward(x, pos_encoding, dropout_p=0.0))
    ref = x + pos_encoding[:S]
    assert out_eval.shape == (S, B, dim_model)
    assert jnp.allclose(out_eval, ref, atol=1e-6, rtol=1e-6)

    # 2) Training-mode run (dropout on, deterministic JAX PRNG key).
    out_train = jax.block_until_ready(
        positional_encoding_forward(x, pos_encoding, dropout_p=dropout_p,
                                    rng_key=kdrop))
    assert out_train.shape == (S, B, dim_model)
    # Kept positions must equal ref * 1/(1-p); dropped positions are exactly 0.
    kept = out_train != 0
    assert jnp.allclose(jnp.where(kept, out_train, 0.0),
                        jnp.where(kept, ref / (1.0 - dropout_p), 0.0),
                        atol=1e-5, rtol=1e-5)

    print("KERNEL_OK")
</pallas_src>

<mosaic_0001>
module attributes {stable_mosaic.version = 11 : i64} {
  func.func @_pe_add_kernel(%arg0: i32, %arg1: memref<8x512xf32, #tpu.memory_space<vmem>>, %arg2: memref<8x512xf32, #tpu.memory_space<vmem>>, %arg3: memref<8x512xf32, #tpu.memory_space<vmem>>) attributes {dimension_semantics = [#tpu.dimension_semantics<parallel>], iteration_bounds = array<i64: 1>, scalar_prefetch = 0 : i64, scratch_operands = 0 : i64, tpu.core_type = #tpu.core_type<tc>, window_params = [{transform_indices = @transform_0, window_bounds = array<i64: 8, 512>}, {transform_indices = @transform_1, window_bounds = array<i64: 8, 512>}, {transform_indices = @transform_2, window_bounds = array<i64: 8, 512>}]} {
    %c0 = arith.constant 0 : index
    %c0_0 = arith.constant 0 : index
    %0 = vector.load %arg1[%c0, %c0_0] : memref<8x512xf32, #tpu.memory_space<vmem>>, vector<8x512xf32>
    %c0_1 = arith.constant 0 : index
    %c0_2 = arith.constant 0 : index
    %1 = vector.load %arg2[%c0_1, %c0_2] : memref<8x512xf32, #tpu.memory_space<vmem>>, vector<8x512xf32>
    %2 = arith.addf %0, %1 : vector<8x512xf32>
    %c0_3 = arith.constant 0 : index
    %c0_4 = arith.constant 0 : index
    %3 = vector.load %arg3[%c0_3, %c0_4] : memref<8x512xf32, #tpu.memory_space<vmem>>, vector<8x512xf32>
    tpu.vector_store %arg3[%c0_3, %c0_4], %2 {strides = array<i32>} : memref<8x512xf32, #tpu.memory_space<vmem>>, vector<8x512xf32>,
    return
  }
  func.func @transform_0(%arg0: i32) -> (i32, i32) {
    %c0_i32 = arith.constant 0 : i32
    %c0_i32_0 = arith.constant 0 : i32
    return %arg0, %c0_i32 : i32, i32
  }
  func.func @transform_1(%arg0: i32) -> (i32, i32) {
    %c0_i32 = arith.constant 0 : i32
    %c0_i32_0 = arith.constant 0 : i32
    return %arg0, %c0_i32 : i32, i32
  }
  func.func @transform_2(%arg0: i32) -> (i32, i32) {
    %c0_i32 = arith.constant 0 : i32
    %c0_i32_0 = arith.constant 0 : i32
    return %arg0, %c0_i32 : i32, i32
  }
}

</mosaic_0001>

<bundles_post_ra>
// kernel: tpu_custom_call.1
= control target key start
LH: loop header
LB: loop body
LE: loop exit
PB: predicated region body
PF: predicated region fallthrough
CT: control target
= control target key end

     0   :  { %7 = vsyncpa [#allocation3], 0  ;;  %s197_s0 = inlined_call_operand.hbm [shape: f32[8,512], index: 0, kind: input, shape index: {}]   ;;  %s198_s1 = inlined_call_operand.hbm [shape: f32[8,512], index: 1, kind: input, shape index: {}]   ;;  %s199_s2 = inlined_call_operand.hbm [shape: f32[8,512], index: 2, kind: output, shape index: {}]  }
   0x1   :  { %8 = vsyncpa [#allocation6], 0 }
   0x2   :  { %9 = vsyncpa [#allocation4], 0  ;;  %s143_s9 = smov [#allocation2]   ;;  %s144_s11 = smov [#allocation5]  }
   0x3   :  { %s16_s10 = sshll.u32 %s143_s9, 4  ;;  %s26_s12 = sshll.u32 %s144_s11, 4  ;;  %s17_s10 = int_to_ptr.vmem [resolvable:$true] %s16_s10  ;;  %s27_s12 = int_to_ptr.vmem [resolvable:$true] %s26_s12 }
   0x4   :  { %s71_s15 = scalar_lea.hbm %s197_s0, 512 }
   0x5   :  { %p72_p0 = scmp.ne.s32.totalorder %s197_s0, %s71_s15  ;;  %p75_p1 = scmp.lt.u32.totalorder %s71_s15, %s197_s0 }
   0x7   :  { %p77_p2 = pnand %p75_p1, %p72_p0 }
   0x9   :  { %80 = shalt.err (!%p77_p2)
}
   0xa   :  { %s81_s20 = scalar_lea.vmem %s17_s10, 512  ;;  %p86_p4 = scmp.lt.s32.totalorder %s17_s10, %s17_s10 }
   0xb   :  { %p82_p3 = scmp.ne.s32.totalorder %s17_s10, %s81_s20  ;;  %p87_p5 = scmp.lt.s32.totalorder %s81_s20, %s81_s20 }
   0xd   :  { %p88_p6 = por %p87_p5, %p86_p4 }
   0xf   :  { %p89_p7 = pnand %p88_p6, %p82_p3 }
  0x11   :  { %92 = shalt.err (!%p89_p7)
}
  0x12   :  { %19 = dma.hbm_to_vmem [thread:$0]  %s197_s0, 512, %s17_s10, [#allocation3]  }
  0x13   :  { %s93_s25 = scalar_lea.hbm %s198_s1, 512 }
  0x14   :  { %p94_p8 = scmp.ne.s32.totalorder %s198_s1, %s93_s25  ;;  %p97_p9 = scmp.lt.u32.totalorder %s93_s25, %s198_s1 }
  0x16   :  { %p99_p10 = pnand %p97_p9, %p94_p8 }
  0x18   :  { %102 = shalt.err (!%p99_p10)
}
  0x19   :  { %s103_s30 = scalar_lea.vmem %s27_s12, 512  ;;  %p108_p12 = scmp.lt.s32.totalorder %s27_s12, %s27_s12 }
  0x1a   :  { %p104_p11 = scmp.ne.s32.totalorder %s27_s12, %s103_s30  ;;  %p109_p13 = scmp.lt.s32.totalorder %s103_s30, %s103_s30 }
  0x1c   :  { %p110_p0 = por %p109_p13, %p108_p12 }
  0x1e   :  { %p111_p1 = pnand %p110_p0, %p104_p11 }
  0x20   :  { %114 = shalt.err (!%p111_p1)
}
  0x21   :  { %29 = dma.hbm_to_vmem [thread:$0]  %s198_s1, 512, %s27_s12, [#allocation6]  }
  0x22   :  { %137 = dma.done.wait [#allocation3], 512  }
  0x23   :  { %138 = vsyncadd [#allocation3], 4294966784 }
  0x24   :  { %139 = dma.done.wait [#allocation6], 512  }
  0x25   :  { %140 = vsyncadd [#allocation6], 4294966784  ;;  %v36_v0 = vld [vmem:[#allocation2] sm:$0xff]  ;;  %v37_v2 = vld [vmem:[#allocation2 + $0x8] sm:$0xff]  ;;  %s145_s4 = smov [#allocation7]  }
  0x26   :  { %v40_v1 = vld [vmem:[#allocation5] sm:$0xff]  ;;  %s58_s5 = sshll.u32 %s145_s4, 4  ;;  %v41_v4 = vld [vmem:[#allocation5 + $0x8] sm:$0xff]  ;;  %v38_v5 = vld [vmem:[#allocation2 + $0x10] sm:$0xff]  ;;  %s59_s5 = int_to_ptr.vmem [resolvable:$true] %s58_s5 }
  0x27   :  { %v44_v3 = vadd.f32 %v40_v1, %v36_v0  ;;  %v42_v6 = vld [vmem:[#allocation5 + $0x10] sm:$0xff]  ;;  %v45_v7 = vadd.f32 %v41_v4, %v37_v2  ;;  %v39_v9 = vld [vmem:[#allocation2 + $0x18] sm:$0xff]  ;;  %s115_s1 = scalar_lea.vmem %s59_s5, 512  ;;  %p120_p3 = scmp.lt.s32.totalorder %s59_s5, %s59_s5 }
  0x28   :  { %v46_v8 = vadd.f32 %v42_v6, %v38_v5  ;;  %v43_v10 = vld [vmem:[#allocation5 + $0x18] sm:$0xff]  ;;  %p116_p2 = scmp.ne.s32.totalorder %s59_s5, %s115_s1  ;;  %p121_p4 = scmp.lt.s32.totalorder %s115_s1, %s115_s1 }
  0x29   :  { %48 = vst [vmem:[#allocation7] sm:$0xff] %v44_v3  ;;  %v47_v11 = vadd.f32 %v43_v10, %v39_v9  ;;  %49 = vst [vmem:[#allocation7 + $0x8] sm:$0xff] %v45_v7 }
  0x2a   :  { %50 = vst [vmem:[#allocation7 + $0x10] sm:$0xff] %v46_v8  ;;  %p122_p5 = por %p121_p4, %p120_p3 }
  0x2b   :  { %51 = vst [vmem:[#allocation7 + $0x18] sm:$0xff] %v47_v11 }
  0x2c   :  { %p123_p6 = pnand %p122_p5, %p116_p2 }
  0x2e   :  { %126 = shalt.err (!%p123_p6)
}
  0x2f   :  { %s127_s8 = scalar_lea.hbm %s199_s2, 512 }
  0x30   :  { %p128_p7 = scmp.ne.s32.totalorder %s199_s2, %s127_s8  ;;  %p131_p8 = scmp.lt.u32.totalorder %s127_s8, %s199_s2 }
  0x32   :  { %p133_p9 = pnand %p131_p8, %p128_p7 }
  0x34   :  { %136 = shalt.err (!%p133_p9)
}
  0x35   :  { %61 = dma.vmem_to_hbm [thread:$0]  %s59_s5, 512, %s199_s2, [#allocation4]  }
  0x36   :  { %141 = dma.done.wait [#allocation4], 512  }
  0x37   :  { %142 = vsyncadd [#allocation4], 4294966784 }
  0x38   :  { %65 = vsyncpa [#allocation3], 1 }
  0x39   :  { %66 = vsyncpa [#allocation6], 1 }
  0x3a   :  { %67 = vsyncpa [#allocation4], 1 }

</bundles_post_ra>
